<compile_context>
chip_gen: v7x
topology: tpu7x:2x2x1
jax: 0.10.0
libtpu: 0.0.40
codegen_flags: <defaults>
</compile_context>

<pallas_src>
import jax
import jax.numpy as jnp
from jax.experimental import pallas as pl
from jax.experimental.pallas import tpu as pltpu

_TARGET_TILE_COLS = 8192   # pixels per grid step (lane axis); multiple of 128
_LANE = 128
_SUBLANE = 8


def encoder_kernel(x1_ref, x2_ref, w_ref, pe_ref, o_ref):
    """One (L-tile, batch-element) grid step, channels-in-sublanes layout.

    x1_ref, x2_ref : [F, tile_L]   pixels of one batch element (L in lanes)
    w_ref          : [E, F]        1x1-conv weight (VMEM resident)
    pe_ref         : [2E, tile_L]  positional encoding + folded bias
    o_ref          : [2E, tile_L]  output block
    """
    e = w_ref.shape[0]
    w = w_ref[...]
    y1 = jnp.dot(w, x1_ref[...], preferred_element_type=jnp.float32)  # [E, tile_L]
    y2 = jnp.dot(w, x2_ref[...], preferred_element_type=jnp.float32)  # [E, tile_L]
    # Concat halves land in disjoint sublane ranges (E is sublane-aligned in
    # practice) -> two full-lane-width unmasked stores, no vreg RMW overlap.
    o_ref[:e, :] = (y1 + pe_ref[:e, :]).astype(o_ref.dtype)
    o_ref[e:, :] = (y2 + pe_ref[e:, :]).astype(o_ref.dtype)


def _padded_block_bytes(shape, itemsize=4):
    """VMEM footprint of one block including (8,128) layout padding."""
    *lead, s, l = shape
    s_pad = -(-s // _SUBLANE) * _SUBLANE
    l_pad = -(-l // _LANE) * _LANE
    n = 1
    for d in lead:
        n *= d
    return n * s_pad * l_pad * itemsize


@jax.jit
def simple_encoder_forward(x1, x2, conv_w, conv_b, pe):
    """x1, x2: [N, F, H, W] (NCHW); conv_w: [E, F, 1, 1]; conv_b: [E];
    pe: [max_len, 1, 2E].  Returns [H*W, N, 2E] (PyTorch convention)."""
    N, F, H, W = x1.shape
    E = conv_w.shape[0]
    C2 = 2 * E
    L = H * W

    # --- Layout glue: free reshapes only (no activation transposes / pads) --
    x1r = x1.reshape(N, F, L)            # [N, F, L]  (view of NCHW)
    x2r = x2.reshape(N, F, L)            # [N, F, L]
    w2d = conv_w.reshape(E, F)           # [E, F]
    # Fold conv bias into the tiny PE once: pe_c[c, l] = pe[l, 0, c] + b[c % E]
    bias2 = jnp.concatenate([conv_b, conv_b]).reshape(C2, 1)
    pe_c = pe[:L].reshape(L, C2).T + bias2          # [2E, L]

    # --- Tile selection over the pixel (lane) axis --------------------------
    if L <= _TARGET_TILE_COLS:
        tile_l = L                       # full extent: always a legal block
    else:
        tile_l = _TARGET_TILE_COLS       # multiple of 128; ragged tail blocks
                                         # are masked by Pallas (no jnp.pad)
    grid = (pl.cdiv(L, tile_l), N)       # batch innermost -> w / pe resident

    x_spec = pl.BlockSpec((None, F, tile_l), lambda i, n: (n, 0, i))
    w_spec = pl.BlockSpec((E, F), lambda i, n: (0, 0))
    pe_spec = pl.BlockSpec((C2, tile_l), lambda i, n: (i, 0))
    o_spec = pl.BlockSpec((None, C2, tile_l), lambda i, n: (n, 0, i))

    # VMEM budget with real (8,128)-padded footprints, double-buffered.
    need = 2 * (2 * _padded_block_bytes((F, tile_l))       # x1 + x2 blocks
                + _padded_block_bytes((C2, tile_l))        # pe block
                + _padded_block_bytes((C2, tile_l))        # out block
                + _padded_block_bytes((E, F)))             # weight
    vmem_limit = int(min(need + (8 << 20), 48 << 20))      # v7x-safe cap

    out = pl.pallas_call(
        encoder_kernel,
        out_shape=jax.ShapeDtypeStruct((N, C2, L), jnp.float32),
        grid=grid,
        in_specs=[x_spec, x_spec, w_spec, pe_spec],
        out_specs=o_spec,
        compiler_params=pltpu.CompilerParams(
            dimension_semantics=("parallel", "parallel"),
            vmem_limit_bytes=vmem_limit,
        ),
    )(x1r, x2r, w2d, pe_c)

    # [N, 2E, L] -> [L, N, 2E]  (layout plumbing left to XLA).
    return out.transpose(2, 0, 1)


if __name__ == "__main__":
    # Small shapes consistent with the module:
    #   feature_dim=4, encoder_dim=8, image_size=4 (H=W=4, L=16), batch=2.
    N, F, E, IMG = 2, 4, 8, 4
    H = W = IMG
    L = H * W

    key = jax.random.PRNGKey(0)
    k1, k2, kw, kb, kpe = jax.random.split(key, 5)

    x1 = jax.random.normal(k1, (N, F, H, W), dtype=jnp.float32)
    x2 = jax.random.normal(k2, (N, F, H, W), dtype=jnp.float32)
    conv_w = jax.random.normal(kw, (E, F, 1, 1), dtype=jnp.float32) * 0.1
    conv_b = jax.random.normal(kb, (E,), dtype=jnp.float32) * 0.1
    pe = jax.random.normal(kpe, (IMG * IMG, 1, 2 * E), dtype=jnp.float32)

    out = simple_encoder_forward(x1, x2, conv_w, conv_b, pe)
    out = jax.block_until_ready(out)

    # Pure-JAX reference for correctness.
    def ref_proj(x):
        y = jnp.einsum("nfhw,ef->nehw", x, conv_w.reshape(E, F)) \
            + conv_b[None, :, None, None]
        return y.reshape(N, E, L).transpose(2, 0, 1)   # [L, N, E]

    expected = jnp.concatenate([ref_proj(x1), ref_proj(x2)], axis=-1) + pe[:L]
    assert out.shape == (L, N, 2 * E), out.shape
    assert jnp.allclose(out, expected, atol=1e-5, rtol=1e-5), \
        float(jnp.max(jnp.abs(out - expected)))

    print("KERNEL_OK")
</pallas_src>

<mosaic_0001>
module attributes {stable_mosaic.version = 11 : i64} {
  func.func @encoder_kernel(%arg0: i32, %arg1: i32, %arg2: memref<1x4x16xf32, #tpu.memory_space<vmem>>, %arg3: memref<1x4x16xf32, #tpu.memory_space<vmem>>, %arg4: memref<8x4xf32, #tpu.memory_space<vmem>>, %arg5: memref<16x16xf32, #tpu.memory_space<vmem>>, %arg6: memref<1x16x16xf32, #tpu.memory_space<vmem>>) attributes {dimension_semantics = [#tpu.dimension_semantics<parallel>, #tpu.dimension_semantics<parallel>], iteration_bounds = array<i64: 1, 2>, scalar_prefetch = 0 : i64, scratch_operands = 0 : i64, tpu.core_type = #tpu.core_type<tc>, window_params = [{transform_indices = @transform_0, window_bounds = array<i64: 1, 4, 16>}, {transform_indices = @transform_1, window_bounds = array<i64: 1, 4, 16>}, {pipeline_mode = #tpu.pipeline_mode<synchronous>, transform_indices = @transform_2, window_bounds = array<i64: 8, 4>}, {transform_indices = @transform_3, window_bounds = array<i64: 16, 16>}, {transform_indices = @transform_4, window_bounds = array<i64: 1, 16, 16>}]} {
    %c0 = arith.constant 0 : index
    %c0_0 = arith.constant 0 : index
    %0 = vector.load %arg4[%c0, %c0_0] : memref<8x4xf32, #tpu.memory_space<vmem>>, vector<8x4xf32>
    %c0_1 = arith.constant 0 : index
    %c0_2 = arith.constant 0 : index
    %c0_3 = arith.constant 0 : index
    %1 = vector.load %arg2[%c0_1, %c0_2, %c0_3] : memref<1x4x16xf32, #tpu.memory_space<vmem>>, vector<1x4x16xf32>
    %2 = vector.shape_cast %1 : vector<1x4x16xf32> to vector<4x16xf32>
    %cst = arith.constant dense<0.000000e+00> : vector<8x16xf32>
    %3 = tpu.matmul %0, %2, %cst {dimension_numbers = #tpu.dot_dimension_numbers<[1], [0], [0], [1], [0, 0, 1, 1], [], []>} : vector<8x4xf32>, vector<4x16xf32>, vector<8x16xf32> -> vector<8x16xf32>
    %c0_4 = arith.constant 0 : index
    %c0_5 = arith.constant 0 : index
    %c0_6 = arith.constant 0 : index
    %4 = vector.load %arg3[%c0_4, %c0_5, %c0_6] : memref<1x4x16xf32, #tpu.memory_space<vmem>>, vector<1x4x16xf32>
    %5 = vector.shape_cast %4 : vector<1x4x16xf32> to vector<4x16xf32>
    %cst_7 = arith.constant dense<0.000000e+00> : vector<8x16xf32>
    %6 = tpu.matmul %0, %5, %cst_7 {dimension_numbers = #tpu.dot_dimension_numbers<[1], [0], [0], [1], [0, 0, 1, 1], [], []>} : vector<8x4xf32>, vector<4x16xf32>, vector<8x16xf32> -> vector<8x16xf32>
    %c0_8 = arith.constant 0 : index
    %c0_9 = arith.constant 0 : index
    %7 = vector.load %arg5[%c0_8, %c0_9] : memref<16x16xf32, #tpu.memory_space<vmem>>, vector<8x16xf32>
    %8 = arith.addf %3, %7 : vector<8x16xf32>
    %c0_10 = arith.constant 0 : index
    %c0_11 = arith.constant 0 : index
    %c0_12 = arith.constant 0 : index
    %9 = vector.load %arg6[%c0_10, %c0_11, %c0_12] : memref<1x16x16xf32, #tpu.memory_space<vmem>>, vector<1x8x16xf32>
    %10 = vector.shape_cast %9 : vector<1x8x16xf32> to vector<8x16xf32>
    %11 = vector.shape_cast %8 : vector<8x16xf32> to vector<1x8x16xf32>
    tpu.vector_store %arg6[%c0_10, %c0_11, %c0_12], %11 {strides = array<i32>} : memref<1x16x16xf32, #tpu.memory_space<vmem>>, vector<1x8x16xf32>,
    %c8 = arith.constant 8 : index
    %c0_13 = arith.constant 0 : index
    %12 = vector.load %arg5[%c8, %c0_13] : memref<16x16xf32, #tpu.memory_space<vmem>>, vector<8x16xf32>
    %13 = arith.addf %6, %12 : vector<8x16xf32>
    %c0_14 = arith.constant 0 : index
    %c8_15 = arith.constant 8 : index
    %c0_16 = arith.constant 0 : index
    %14 = vector.load %arg6[%c0_14, %c8_15, %c0_16] : memref<1x16x16xf32, #tpu.memory_space<vmem>>, vector<1x8x16xf32>
    %15 = vector.shape_cast %14 : vector<1x8x16xf32> to vector<8x16xf32>
    %16 = vector.shape_cast %13 : vector<8x16xf32> to vector<1x8x16xf32>
    tpu.vector_store %arg6[%c0_14, %c8_15, %c0_16], %16 {strides = array<i32>} : memref<1x16x16xf32, #tpu.memory_space<vmem>>, vector<1x8x16xf32>,
    return
  }
  func.func @transform_0(%arg0: i32, %arg1: i32) -> (i32, i32, i32) {
    %c0_i32 = arith.constant 0 : i32
    %c0_i32_0 = arith.constant 0 : i32
    return %arg1, %c0_i32, %arg0 : i32, i32, i32
  }
  func.func @transform_1(%arg0: i32, %arg1: i32) -> (i32, i32, i32) {
    %c0_i32 = arith.constant 0 : i32
    %c0_i32_0 = arith.constant 0 : i32
    return %arg1, %c0_i32, %arg0 : i32, i32, i32
  }
  func.func @transform_2(%arg0: i32, %arg1: i32) -> (i32, i32) {
    %c0_i32 = arith.constant 0 : i32
    %c0_i32_0 = arith.constant 0 : i32
    %c0_i32_1 = arith.constant 0 : i32
    return %c0_i32, %c0_i32_0 : i32, i32
  }
  func.func @transform_3(%arg0: i32, %arg1: i32) -> (i32, i32) {
    %c0_i32 = arith.constant 0 : i32
    %c0_i32_0 = arith.constant 0 : i32
    return %arg0, %c0_i32 : i32, i32
  }
  func.func @transform_4(%arg0: i32, %arg1: i32) -> (i32, i32, i32) {
    %c0_i32 = arith.constant 0 : i32
    %c0_i32_0 = arith.constant 0 : i32
    return %arg1, %c0_i32, %arg0 : i32, i32, i32
  }
}

</mosaic_0001>

<bundles_post_ra>
// kernel: simple_encoder_forward.1
= control target key start
LH: loop header
LB: loop body
LE: loop exit
PB: predicated region body
PF: predicated region fallthrough
CT: control target
= control target key end

     0   :  { %s654_s15 = smov 0   ;;  %s656_s16 = smov 0   ;;  %s699_s0 = inlined_call_operand.vmem [shape: f32[2,4,16], index: 0, kind: input, shape index: {}]   ;;  %s700_s1 = inlined_call_operand.vmem [shape: f32[2,4,16], index: 1, kind: input, shape index: {}]   ;;  %s701_s2 = inlined_call_operand.vmem [shape: f32[8,4], index: 2, kind: input, shape index: {}]   ;;  %s702_s3 = inlined_call_operand.vmem [shape: f32[16,16], index: 3, kind: input, shape index: {}]   ;;  %s703_s4 = inlined_call_operand.vmem [shape: f32[2,16,16], index: 4, kind: output, shape index: {}]  }
   0x1   :  { %s658_s17 = smov 0  }
   0x2 LB: > { %s23_s18 = sadd.s32 1, %s621_s16  ;;  %p551_p0 = scmp.ge.s32.totalorder %s625_s17, 1  ;;  %s625_s17 = sphi %s658_s17, %s14_s17   ;;  %s621_s16 = sphi %s656_s16, %s705_s16   ;;  %s617_s15 = sphi %s654_s15, %s704_s15  }
   0x3   : > { %p24_p1 = scmp.ge.s32.totalorder %s23_s18, 2  ;;  %p205_p2 = scmp.lt.s32.totalorder %s625_s17, 3 }
   0x5   : > { %s707_s18 = smov (%p24_p1, %s23_s18), 0  ;;  %p206_p3 = pnand %p551_p0, %p205_p2 }
   0x6   : > { %p248_p4 = scmp.lt.s32.totalorder (!%p206_p3), %s617_s15, 1  ;;  %v627_v0 = vmov (!%p206_p3), 0.0   ;;  %vm628_vm0 = vmmov (!%p206_p3), 0   ;;  %vm284_vm1 = vcmask (!%p206_p3), 1043456   ;;  %v276_v1 = vld [vmem:[%s701_s2] sm:$0xff] (!%p206_p3)  ;;  %vm280_vm2 = vcmask (!%p206_p3), 31744  }
   0x7   : > { %209 = sbr.rel (%p206_p3) target bundleno = 235 (0xeb), region = 36  ;;  %567 = vmatprep.subr.mxu0 (!%p206_p3), %v627_v0  ;;  %572 = vmatprep.subr.mxu1 (!%p206_p3), %v627_v0  ;;  %v279_v4 = vld [vmem:[%s702_s3] sm:$0xff] (!%p206_p3)  ;;  %v360_v5 = vld [vmem:[%s702_s3 + $0x8] sm:$0xff] (!%p206_p3)  ;;  %vm358_vm3 = vcmask (!%p206_p3), 130048  }
   0x8   : > { %569 = vmatprep.mubr.msk.f32.mxu0 (!%p206_p3), %vm628_vm0, %v627_v0  ;;  %574 = vmatprep.mubr.msk.f32.mxu1 (!%p206_p3), %vm628_vm0, %v627_v0 }
   0xe   : > { %s709_s15 = smov (!%p248_p4, %s617_s15), 1 }
   0xf   : > { %s552_s19 = sshll.u32 %s709_s15, 2  ;;  %s562_s28 = sshll.u32 %s709_s15, 4 }
  0x10   : > { %s254_s22 = scalar_lea.vmem %s699_s0, %s552_s19  ;;  %s261_s25 = scalar_lea.vmem %s700_s1, %s552_s19 }
  0x11   : > { %v277_v2 = vld [vmem:[%s254_s22] sm:$0xf]  ;;  %s275_s9 = scalar_lea.vmem %s703_s4, %s562_s28 }
  0x12   : > { %v278_v3 = vld [vmem:[%s261_s25] sm:$0xf]  ;;  %568 = vmatpush3.msk.msra.mxu0 %vm284_vm1, %v277_v2 }
  0x13   : > { %573 = vmatpush3.msk.msra.mxu1 %vm284_vm1, %v278_v3  ;;  %570 = vmatmul.mubr.msk.f32.vlgmr.msra.gmra.mrb[0].mxu0 %vm280_vm2, %v276_v1 }
  0x14   : > { %575 = vmatmul.mubr.msk.f32.vlgmr.msra.gmra.mrb[0].mxu1 %vm280_vm2, %v276_v1 }
  0xe6   : > { %v354_v6 = vpop.f32.mrb[0].mxu0 }
  0xe7   : > { %v430_v7 = vpop.f32.mrb[0].mxu1  ;;  %v355_v8 = vadd.f32 %v354_v6, %v279_v4  ;;  %v571_v10 = vpop.f32.mrb[1].mxu0 }
  0xe8   : > { %v431_v9 = vadd.f32 %v430_v7, %v360_v5  ;;  %v576_v11 = vpop.f32.mrb[1].mxu1 }
  0xe9   : > { %359 = vst.msk [vmem:[%s275_s9] sm:$0xff] %vm358_vm3, %v355_v8 }
  0xea   : > { %434 = vst.msk [vmem:[%s275_s9 + $0x8] sm:$0xff] %vm358_vm3, %v431_v9 }
  0xeb PF: > { %s14_s17 = sadd.s32 1, %s625_s17   ;;  %s704_s15 = smov %s621_s16 }
  0xec   : > { %p11_p5 = scmp.ge.s32.totalorder %s14_s17, 4   ;;  %s705_s16 = smov %s707_s18 }
  0xee   :  { %13 = sbr.rel (!%p11_p5) target bundleno = 2 (0x2), region = 72 }

</bundles_post_ra>
